<compile_context>
chip_gen: v5e
topology: v5e:2x2
jax: 0.10.0
libtpu: 0.0.40
codegen_flags: <defaults>
</compile_context>

<pallas_src>
import functools
import math

import jax
import jax.numpy as jnp
from jax.experimental import pallas as pl
from jax.experimental.pallas import tpu as pltpu


_TILE_TARGET_BYTES = 1 * 1024 * 1024  # ~1 MiB per x tile; 2-3 operands x 2 buffers
                                      # stays well under v5e's 16 MiB scoped VMEM
                                      # and v7x's 32 MiB scoped / 64 MiB physical.


# ---------------------------------------------------------------------------
# Kernels
# ---------------------------------------------------------------------------

def _pe_add_kernel(x_ref, pe_ref, o_ref):
    # x_ref and pe_ref blocks have broadcast-compatible shapes; pe broadcasts
    # over the batch / row axis.
    o_ref[...] = (x_ref[...] + pe_ref[...]).astype(o_ref.dtype)


def _pe_add_dropout_kernel(x_ref, pe_ref, bits_ref, o_ref, *, threshold, scale):
    y = x_ref[...] + pe_ref[...]
    # Inverted dropout: keep with prob (1 - p) by comparing raw uint32 bits
    # against an integer threshold; kept values scaled by 1/(1-p).
    keep = bits_ref[...] >= jnp.uint32(threshold)
    o_ref[...] = jnp.where(keep, y * scale, 0.0).astype(o_ref.dtype)


# ---------------------------------------------------------------------------
# Parameter setup (plain JAX glue, mirrors the PyTorch __init__)
# ---------------------------------------------------------------------------

def build_pe_table(max_length: int, d_model: int) -> jnp.ndarray:
    """Sinusoidal positional-embedding table, shape (max_length, d_model)."""
    position = jnp.arange(0, max_length, dtype=jnp.float32)[:, None]
    divided_term = jnp.exp(
        jnp.arange(0.0, d_model, 2.0, dtype=jnp.float32)
        * (-math.log(10000.0) / d_model)
    )
    pe = jnp.zeros((max_length, d_model), dtype=jnp.float32)
    pe = pe.at[:, 0::2].set(jnp.sin(position * divided_term))
    pe = pe.at[:, 1::2].set(jnp.cos(position * divided_term))
    return pe


# ---------------------------------------------------------------------------
# Wrapper
# ---------------------------------------------------------------------------

def _pick_row_tile(n_rows: int, row_width: int, itemsize: int) -> int:
    """Rows per tile: multiple of 8 (sublane), ~_TILE_TARGET_BYTES per block."""
    if n_rows <= 8 or n_rows * row_width * itemsize <= _TILE_TARGET_BYTES:
        return n_rows
    t = (_TILE_TARGET_BYTES // (row_width * itemsize)) // 8 * 8
    return int(max(8, min(t, n_rows)))


def positional_embedding(x, pe, *, dropout_p=0.1, training=False, rng_key=None):
    """x: (B, S, D); pe: (max_length, D) with max_length >= S. Returns (B, S, D)."""
    B, S, D = x.shape
    max_length = pe.shape[0]
    assert pe.shape[1] == D and max_length >= S
    itemsize = jnp.dtype(x.dtype).itemsize

    # Do the add in x's dtype (bf16 fast path on v6e/v7x); cast pe once here.
    pe = pe.astype(x.dtype)

    apply_dropout = bool(training) and float(dropout_p) > 0.0
    if apply_dropout:
        if rng_key is None:
            rng_key = jax.random.PRNGKey(0)
        # TODO(synk): dropout mask RNG uses JAX's counter-based PRNG (generated
        # outside the kernel), not torch's RNG stream -- masks are not bit-identical.
        bits = jax.random.bits(rng_key, (B, S, D), dtype=jnp.uint32)
        threshold = min(int(round(float(dropout_p) * 2.0 ** 32)), 2 ** 32 - 1)
        scale = 1.0 / (1.0 - float(dropout_p))
        kernel = functools.partial(
            _pe_add_dropout_kernel, threshold=threshold, scale=scale
        )
    else:
        bits = None
        kernel = _pe_add_kernel

    lane_dense_fallback = (
        D < 128 and (S * D) % 128 == 0 and S * D * itemsize <= _TILE_TARGET_BYTES
    )

    if lane_dense_fallback:
        # Small d_model: collapse (S, D) into one lane axis so the output is
        # lane-dense (full 128-lane stores instead of masked vst.msk).
        SD = S * D
        xk = x.reshape(B, SD)
        pek = pe[:S].reshape(1, SD)          # tiny; slice cost negligible here
        bitsk = bits.reshape(B, SD) if apply_dropout else None

        tb = _pick_row_tile(B, SD, itemsize)
        grid = (pl.cdiv(B, tb),)
        x_spec = pl.BlockSpec((tb, SD), lambda i: (i, 0))
        pe_spec = pl.BlockSpec((1, SD), lambda i: (0, 0))  # constant -> DMA'd once
        out_shape_k = jax.ShapeDtypeStruct((B, SD), x.dtype)
        dim_sem = ("parallel",)
    else:
        # General path: tile the sequence axis; batch on the INNER grid axis so
        # the pe block index is unchanged across consecutive steps (no re-DMA).
        xk = x
        pek = pe.reshape(1, max_length, D)   # free view; window chosen by BlockSpec
        bitsk = bits

        ts = _pick_row_tile(S, D, itemsize)
        grid = (pl.cdiv(S, ts), B)
        x_spec = pl.BlockSpec((1, ts, D), lambda s, b: (b, s, 0))
        pe_spec = pl.BlockSpec((1, ts, D), lambda s, b: (0, s, 0))
        out_shape_k = jax.ShapeDtypeStruct((B, S, D), x.dtype)
        dim_sem = ("parallel", "parallel")

    in_specs = [x_spec, pe_spec]
    args = [xk, pek]
    if apply_dropout:
        in_specs.append(x_spec)  # bits block mirrors the x block
        args.append(bitsk)

    out = pl.pallas_call(
        kernel,
        out_shape=out_shape_k,
        grid=grid,
        in_specs=in_specs,
        out_specs=x_spec,
        compiler_params=pltpu.CompilerParams(dimension_semantics=dim_sem),
    )(*args)

    return out.reshape(B, S, D)


# ---------------------------------------------------------------------------
# Demo / self-check
# ---------------------------------------------------------------------------

if __name__ == "__main__":
    DROPOUT_P = 0.1

    # --- Small-D path (demo shapes implied by the module): (B, S, D) = (2, 8, 32)
    B, S, D = 2, 8, 32
    MAX_LENGTH = 16
    key = jax.random.PRNGKey(0)
    x = jax.random.normal(key, (B, S, D), dtype=jnp.float32)
    pe = build_pe_table(MAX_LENGTH, D)

    # Eval mode (dropout is identity) -- deterministic, check against reference.
    out_eval = positional_embedding(x, pe, dropout_p=DROPOUT_P, training=False)
    out_eval = jax.block_until_ready(out_eval)
    ref = x + pe[None, :S, :]
    assert out_eval.shape == (B, S, D)
    assert jnp.allclose(out_eval, ref, atol=1e-6, rtol=1e-6), "eval-mode mismatch"

    # Training mode (inverted dropout) -- every output is 0 or (x+pe)/(1-p).
    out_train = positional_embedding(
        x, pe, dropout_p=DROPOUT_P, training=True, rng_key=jax.random.PRNGKey(123)
    )
    out_train = jax.block_until_ready(out_train)
    scaled = ref * (1.0 / (1.0 - DROPOUT_P))
    ok = jnp.isclose(out_train, 0.0) | jnp.isclose(out_train, scaled,
                                                   atol=1e-5, rtol=1e-5)
    assert out_train.shape == (B, S, D)
    assert bool(jnp.all(ok)), "training-mode dropout values out of range"

    # --- General tiled path (D >= 128): (B, S, D) = (2, 16, 128)
    B2, S2, D2 = 2, 16, 128
    x2 = jax.random.normal(jax.random.PRNGKey(1), (B2, S2, D2), dtype=jnp.float32)
    pe2 = build_pe_table(32, D2)
    out2 = positional_embedding(x2, pe2, dropout_p=DROPOUT_P, training=False)
    out2 = jax.block_until_ready(out2)
    ref2 = x2 + pe2[None, :S2, :]
    assert jnp.allclose(out2, ref2, atol=1e-6, rtol=1e-6), "tiled-path mismatch"

    print("KERNEL_OK")
</pallas_src>

<mosaic_0001>
module attributes {stable_mosaic.version = 11 : i64} {
  func.func @_pe_add_kernel(%arg0: i32, %arg1: memref<2x256xf32, #tpu.memory_space<vmem>>, %arg2: memref<1x256xf32, #tpu.memory_space<vmem>>, %arg3: memref<2x256xf32, #tpu.memory_space<vmem>>) attributes {dimension_semantics = [#tpu.dimension_semantics<parallel>], iteration_bounds = array<i64: 1>, scalar_prefetch = 0 : i64, scratch_operands = 0 : i64, tpu.core_type = #tpu.core_type<tc>, window_params = [{transform_indices = @transform_0, window_bounds = array<i64: 2, 256>}, {pipeline_mode = #tpu.pipeline_mode<synchronous>, transform_indices = @transform_1, window_bounds = array<i64: 1, 256>}, {transform_indices = @transform_2, window_bounds = array<i64: 2, 256>}]} {
    %c0 = arith.constant 0 : index
    %c0_0 = arith.constant 0 : index
    %0 = vector.load %arg1[%c0, %c0_0] : memref<2x256xf32, #tpu.memory_space<vmem>>, vector<2x256xf32>
    %c0_1 = arith.constant 0 : index
    %c0_2 = arith.constant 0 : index
    %1 = vector.load %arg2[%c0_1, %c0_2] : memref<1x256xf32, #tpu.memory_space<vmem>>, vector<1x256xf32>
    %2 = vector.broadcast %1 : vector<1x256xf32> to vector<2x256xf32>
    %3 = arith.addf %0, %2 : vector<2x256xf32>
    %c0_3 = arith.constant 0 : index
    %c0_4 = arith.constant 0 : index
    %4 = vector.load %arg3[%c0_3, %c0_4] : memref<2x256xf32, #tpu.memory_space<vmem>>, vector<2x256xf32>
    tpu.vector_store %arg3[%c0_3, %c0_4], %3 {strides = array<i32>} : memref<2x256xf32, #tpu.memory_space<vmem>>, vector<2x256xf32>,
    return
  }
  func.func @transform_0(%arg0: i32) -> (i32, i32) {
    %c0_i32 = arith.constant 0 : i32
    %c0_i32_0 = arith.constant 0 : i32
    return %arg0, %c0_i32 : i32, i32
  }
  func.func @transform_1(%arg0: i32) -> (i32, i32) {
    %c0_i32 = arith.constant 0 : i32
    %c0_i32_0 = arith.constant 0 : i32
    %c0_i32_1 = arith.constant 0 : i32
    return %c0_i32, %c0_i32_0 : i32, i32
  }
  func.func @transform_2(%arg0: i32) -> (i32, i32) {
    %c0_i32 = arith.constant 0 : i32
    %c0_i32_0 = arith.constant 0 : i32
    return %arg0, %c0_i32 : i32, i32
  }
}

</mosaic_0001>

<bundles_post_ra>
// kernel: tpu_custom_call.1
= control target key start
LH: loop header
LB: loop body
LE: loop exit
PB: predicated region body
PF: predicated region fallthrough
CT: control target
= control target key end

     0   :  { %7 = vsyncpa [#allocation3], 0  ;;  %s177_s0 = inlined_call_operand.hbm [shape: f32[2,256], index: 0, kind: input, shape index: {}]   ;;  %s178_s1 = inlined_call_operand.hbm [shape: f32[1,256], index: 1, kind: input, shape index: {}]   ;;  %s179_s2 = inlined_call_operand.hbm [shape: f32[2,256], index: 2, kind: output, shape index: {}]  }
   0x1   :  { %8 = vsyncpa [#allocation6], 0 }
   0x2   :  { %9 = vsyncpa [#allocation4], 0  ;;  %s15_s11 = sshll.u32 %s177_s0, 4  ;;  %s150_s12 = smov [#allocation2]   ;;  %s16_s11 = int_to_ptr.hbm [resolvable:$true] %s15_s11 }
   0x3   :  { %s17_s13 = sshll.u32 %s150_s12, 4  ;;  %s26_s16 = sshll.u32 %s178_s1, 4  ;;  %s18_s13 = int_to_ptr.vmem [resolvable:$true] %s17_s13  ;;  %s27_s16 = int_to_ptr.hbm [resolvable:$true] %s26_s16 }
   0x4   :  { %20 = dma.hbm_to_vmem [thread:$0]  %s16_s11, 64, %s18_s13, [#allocation3]  }
   0x5   :  { %s151_s17 = smov [#allocation5]  }
   0x6   :  { %s28_s18 = sshll.u32 %s151_s17, 4  ;;  %s29_s18 = int_to_ptr.vmem [resolvable:$true] %s28_s18 }
   0x7   :  { %31 = dma.hbm_to_vmem [thread:$0]  %s27_s16, 32, %s29_s18, [#allocation6]  }
   0x8   :  { %144 = dma.done.wait [#allocation3], 64  }
   0x9   :  { %145 = vsyncadd [#allocation3], 4294967232 }
   0xa   :  { %146 = dma.done.wait [#allocation6], 32  }
   0xb   :  { %147 = vsyncadd [#allocation6], 4294967264  ;;  %v41_v0 = vld [vmem:[#allocation5] sm:$0x3]  ;;  %vm46_vm0 = vcmask 1041408   ;;  %s152_s0 = smov [#allocation7]  }
   0xc   :  { %v43_v1 = vperm.slane %v41_v0, 0  ;;  %v44_v2 = vperm.slane %v41_v0, 1  ;;  %v40_v3 = vld [vmem:[#allocation2] sm:$0xf]  ;;  %s56_s19 = sshll.u32 %s152_s0, 4  ;;  %s58_s21 = sshll.u32 %s179_s2, 4  ;;  %s57_s19 = int_to_ptr.vmem [resolvable:$true] %s56_s19  ;;  %s59_s21 = int_to_ptr.hbm [resolvable:$true] %s58_s21 }
   0xe   :  { %v45_v4 = vrot.slane %v44_v2, 6 }
  0x10   :  { %v47_v5 = vsel %vm46_vm0, %v43_v1, %v45_v4 }
  0x11   :  { %v49_v6 = vadd.f32 %v47_v5, %v40_v3 }
  0x13   :  { %50 = vst [vmem:[#allocation7] sm:$0xf] %v49_v6 }
  0x14   :  { %61 = dma.vmem_to_hbm [thread:$0]  %s57_s19, 64, %s59_s21, [#allocation4]  }
  0x15   :  { %148 = dma.done.wait [#allocation4], 64  }
  0x16   :  { %149 = vsyncadd [#allocation4], 4294967232 }
  0x17   :  { %66 = vsyncpa [#allocation3], 1 }
  0x18   :  { %67 = vsyncpa [#allocation6], 1 }
  0x19   :  { %68 = vsyncpa [#allocation4], 1 }

</bundles_post_ra>
